<compile_context>
chip_gen: v6e
topology: v6e:2x2x1
jax: 0.10.0
libtpu: 0.0.40
codegen_flags: <defaults>
</compile_context>

<pallas_src>
import functools

import jax
import jax.numpy as jnp
import numpy as np
from jax.experimental import pallas as pl
from jax.experimental.pallas import tpu as pltpu


# ----------------------------------------------------------------------------
# Fused kernel: conv (im2col matmul) -> LSTM over time -> maxpool -> MLP head
# ----------------------------------------------------------------------------
def _make_fused_kernel(A, B, D, H, H2, C, nK, L):
    S = nK * A

    def kernel(*refs):
        x_col_ref, w_conv_ref, b_conv_ref = refs[0:3]
        lstm_refs = refs[3:3 + 3 * L]
        w1_ref, b1_ref, w2_ref, b2_ref = refs[3 + 3 * L: 7 + 3 * L]
        o_ref = refs[7 + 3 * L]
        seq_sc, h_sc, c_sc, pooled_sc = refs[8 + 3 * L:]

        t = pl.program_id(0)

        # ---- t == 0: all convolutions as one matmul, init LSTM / pool state --
        @pl.when(t == 0)
        def _init():
            conv = jnp.dot(x_col_ref[...], w_conv_ref[...],
                           preferred_element_type=jnp.float32) + b_conv_ref[...]
            conv = jnp.maximum(conv, 0.0)              # ReLU, (A*B, nK*D)
            # Scatter into the (S, B, D) sequence scratch in torch.cat(dim=0)
            # order: seq index s = ki*A + a, "batch" index = original W position.
            for ki in range(nK):
                for a in range(A):
                    seq_sc[ki * A + a] = conv[a * B:(a + 1) * B,
                                              ki * D:(ki + 1) * D]
            h_sc[...] = jnp.zeros_like(h_sc)
            c_sc[...] = jnp.zeros_like(c_sc)
            pooled_sc[...] = jnp.full_like(pooled_sc, -jnp.inf)

        # ---- one LSTM step per grid iteration (stacked layers, fused gates) --
        x_t = seq_sc[t]                                 # (B, D)
        for l in range(L):
            wih_ref, whh_ref, b_ref = lstm_refs[3 * l: 3 * l + 3]
            gates = (jnp.dot(x_t, wih_ref[...], preferred_element_type=jnp.float32)
                     + jnp.dot(h_sc[l], whh_ref[...],
                               preferred_element_type=jnp.float32)
                     + b_ref[...])                      # (B, 4H) lane-dense
            i_g = jax.nn.sigmoid(gates[:, 0 * H:1 * H])  # PyTorch order i,f,g,o
            f_g = jax.nn.sigmoid(gates[:, 1 * H:2 * H])
            g_g = jnp.tanh(gates[:, 2 * H:3 * H])
            o_g = jax.nn.sigmoid(gates[:, 3 * H:4 * H])
            c_new = f_g * c_sc[l] + i_g * g_g
            h_new = o_g * jnp.tanh(c_new)
            c_sc[l] = c_new
            h_sc[l] = h_new
            x_t = h_new

        # ---- running max-pool over time (== max_pool1d over full S) ---------
        pooled_sc[...] = jnp.maximum(pooled_sc[...], x_t)

        # ---- t == S-1: tanh -> Linear -> tanh -> Linear ----------------------
        @pl.when(t == S - 1)
        def _head():
            t1 = jnp.tanh(pooled_sc[...])
            z1 = (jnp.dot(t1, w1_ref[...], preferred_element_type=jnp.float32)
                  + b1_ref[...])
            t2 = jnp.tanh(z1)
            o_ref[...] = (jnp.dot(t2, w2_ref[...],
                                  preferred_element_type=jnp.float32)
                          + b2_ref[...])

    return kernel


def _full_spec(shape):
    ndim = len(shape)
    return pl.BlockSpec(shape, lambda *_: (0,) * ndim)


def clstm_forward(x_ids, params, KK):
    """Full CLSTM forward.  x_ids: (A, B) int32 token ids -> logits (B, C)."""
    A, B = x_ids.shape
    D = params["embed"].shape[1]
    nK = len(KK)
    L = len(params["lstm"])
    H = params["lstm"][0][1].shape[-1]
    H2 = params["w1"].shape[-1]
    C = params["w2"].shape[-1]
    S = nK * A

    # ---- plain-JAX glue: embedding gather + single im2col (pad once) --------
    emb = params["embed"][x_ids]                         # (A, B, D), dropout=id
    Pmax = max(K // 2 for K in KK)
    Kmax = 2 * Pmax + 1
    x_pad = jnp.pad(emb, ((0, 0), (Pmax, Pmax), (0, 0)))  # (A, B+2*Pmax, D)
    x_col = jnp.concatenate([x_pad[:, j:j + B, :] for j in range(Kmax)],
                            axis=-1).reshape(A * B, Kmax * D)

    # ---- fuse all conv kernels into one (Kmax*D, nK*D) weight ---------------
    w_conv = jnp.zeros((Kmax * D, nK * D), jnp.float32)
    b_parts = []
    for ki, (K, (w_kio, b)) in enumerate(zip(KK, params["convs"])):
        s = Pmax - K // 2                                # tap offset inside Kmax
        w_conv = w_conv.at[s * D:(s + K) * D, ki * D:(ki + 1) * D].set(
            w_kio.reshape(K * D, -1))
        b_parts.append(b)
    b_conv = jnp.concatenate(b_parts, axis=-1)           # (1, nK*D)

    # ---- fuse LSTM gate weights: (4, Din, H) -> (Din, 4H), order i,f,g,o ----
    lstm_inputs = []
    for (wih, whh, bias) in params["lstm"]:
        Din = wih.shape[1]
        lstm_inputs += [jnp.transpose(wih, (1, 0, 2)).reshape(Din, 4 * H),
                        jnp.transpose(whh, (1, 0, 2)).reshape(H, 4 * H),
                        jnp.transpose(bias, (1, 0, 2)).reshape(1, 4 * H)]

    inputs = [x_col, w_conv, b_conv] + lstm_inputs + [
        params["w1"], params["b1"], params["w2"], params["b2"]]

    kernel = _make_fused_kernel(A, B, D, H, H2, C, nK, L)
    return pl.pallas_call(
        kernel,
        out_shape=jax.ShapeDtypeStruct((B, C), jnp.float32),
        grid=(S,),
        in_specs=[_full_spec(x.shape) for x in inputs],
        out_specs=_full_spec((B, C)),
        scratch_shapes=[
            pltpu.VMEM((S, B, D), jnp.float32),          # conv output sequence
            pltpu.VMEM((L, B, H), jnp.float32),          # h per layer
            pltpu.VMEM((L, B, H), jnp.float32),          # c per layer
            pltpu.VMEM((B, H), jnp.float32),             # running max-pool
        ],
        # Time axis carries h/c/pooled state -> must stay "arbitrary".
        compiler_params=pltpu.CompilerParams(
            dimension_semantics=("arbitrary",)),
    )(*inputs)


# ----------------------------------------------------------------------------
# Pure-JAX reference mirroring the PyTorch math (for correctness check)
# ----------------------------------------------------------------------------
def clstm_reference(x_ids, params, KK):
    emb = params["embed"][x_ids]
    outs = []
    for K, (w_kio, b) in zip(KK, params["convs"]):
        pad = K // 2
        xp = jnp.pad(emb, ((0, 0), (pad, pad), (0, 0)))
        Bdim = xp.shape[1] - (K - 1)
        acc = jnp.zeros((xp.shape[0], Bdim, w_kio.shape[-1]), jnp.float32)
        for k in range(K):
            acc = acc + jnp.einsum("abd,de->abe", xp[:, k:k + Bdim, :], w_kio[k])
        outs.append(jax.nn.relu(acc + b))
    seq = jnp.concatenate(outs, axis=0)
    for (wih, whh, bias) in params["lstm"]:
        S, B, _ = seq.shape
        H = whh.shape[-1]
        h = jnp.zeros((B, H)); c = jnp.zeros((B, H))
        ys = []
        for t in range(S):
            x_t = seq[t]
            g = [x_t @ wih[k] + h @ whh[k] + bias[k] for k in range(4)]
            i_g, f_g = jax.nn.sigmoid(g[0]), jax.nn.sigmoid(g[1])
            g_g, o_g = jnp.tanh(g[2]), jax.nn.sigmoid(g[3])
            c = f_g * c + i_g * g_g
            h = o_g * jnp.tanh(c)
            ys.append(h)
        seq = jnp.stack(ys, axis=0)
    pooled = jnp.max(seq, axis=0)
    z1 = jnp.tanh(pooled) @ params["w1"] + params["b1"]
    return jnp.tanh(z1) @ params["w2"] + params["b2"]


# ----------------------------------------------------------------------------
# Deterministic parameter setup + run
# ----------------------------------------------------------------------------
def build_params(key, V, D, H, H2, C, KK, num_layers, padding_id):
    ks = jax.random.split(key, 4 + 4 * len(KK) + 4 * num_layers + 4)
    it = iter(ks)

    def rnd(shape):
        return 0.1 * jax.random.normal(next(it), shape, jnp.float32)

    embed = rnd((V, D)).at[padding_id].set(0.0)          # padding_idx row zeroed

    convs = []
    for K in KK:
        w_torch = rnd((D, 1, K, D))                      # PyTorch (Cout,Cin,kH,kW)
        b = rnd((D,))
        w_kio = jnp.transpose(w_torch[:, 0, :, :], (1, 2, 0))   # (K, Din, Dout)
        convs.append((w_kio, b.reshape(1, D)))

    lstm = []
    din = D
    for _ in range(num_layers):
        wih = rnd((4, din, H))                           # weight_ih.T split i,f,g,o
        whh = rnd((4, H, H))
        bias = rnd((4, 1, H)) + rnd((4, 1, H))           # b_ih + b_hh
        lstm.append((wih, whh, bias))
        din = H

    w1 = rnd((H, H2)); b1 = rnd((1, H2))
    w2 = rnd((H2, C)); b2 = rnd((1, C))
    return dict(embed=embed, convs=convs, lstm=lstm, w1=w1, b1=b1, w2=w2, b2=b2)


if __name__ == "__main__":
    # args: embed_num=50, embed_dim=16, class_num=4, kernel_sizes=[3,4]->KK=[3,5],
    #       lstm_hidden_dim=32, lstm_num_layers=1, paddingId=0
    V, D, C, H, H2 = 50, 16, 4, 32, 16
    Ks = [3, 4]
    KK = tuple(K + 1 if K % 2 == 0 else K for K in Ks)
    num_layers = 1
    padding_id = 0
    A, B = 2, 8                                          # x: (A, B) token ids

    key = jax.random.PRNGKey(0)
    kp, kx = jax.random.split(key)
    params = build_params(kp, V, D, H, H2, C, KK, num_layers, padding_id)
    x_ids = jax.random.randint(kx, (A, B), 0, V, dtype=jnp.int32)

    fwd = jax.jit(functools.partial(clstm_forward, KK=KK))
    logits = jax.block_until_ready(fwd(x_ids, params))
    ref = jax.block_until_ready(clstm_reference(x_ids, params, KK))

    assert logits.shape == (B, C), logits.shape
    assert np.all(np.isfinite(np.asarray(logits)))
    np.testing.assert_allclose(np.asarray(logits), np.asarray(ref),
                               rtol=1e-4, atol=1e-4)
    print("KERNEL_OK")
</pallas_src>

<mosaic_0001>
module attributes {stable_mosaic.version = 11 : i64} {
  func.func @kernel(%arg0: i32, %arg1: memref<16x80xf32, #tpu.memory_space<vmem>>, %arg2: memref<80x32xf32, #tpu.memory_space<vmem>>, %arg3: memref<1x32xf32, #tpu.memory_space<vmem>>, %arg4: memref<16x128xf32, #tpu.memory_space<vmem>>, %arg5: memref<32x128xf32, #tpu.memory_space<vmem>>, %arg6: memref<1x128xf32, #tpu.memory_space<vmem>>, %arg7: memref<32x16xf32, #tpu.memory_space<vmem>>, %arg8: memref<1x16xf32, #tpu.memory_space<vmem>>, %arg9: memref<16x4xf32, #tpu.memory_space<vmem>>, %arg10: memref<1x4xf32, #tpu.memory_space<vmem>>, %arg11: memref<8x4xf32, #tpu.memory_space<vmem>>, %arg12: memref<4x8x16xf32, #tpu.memory_space<vmem>>, %arg13: memref<1x8x32xf32, #tpu.memory_space<vmem>>, %arg14: memref<1x8x32xf32, #tpu.memory_space<vmem>>, %arg15: memref<8x32xf32, #tpu.memory_space<vmem>>) attributes {dimension_semantics = [#tpu.dimension_semantics<arbitrary>], iteration_bounds = array<i64: 4>, scalar_prefetch = 0 : i64, scratch_operands = 4 : i64, tpu.core_type = #tpu.core_type<tc>, window_params = [{pipeline_mode = #tpu.pipeline_mode<synchronous>, transform_indices = @transform_0, window_bounds = array<i64: 16, 80>}, {pipeline_mode = #tpu.pipeline_mode<synchronous>, transform_indices = @transform_1, window_bounds = array<i64: 80, 32>}, {pipeline_mode = #tpu.pipeline_mode<synchronous>, transform_indices = @transform_2, window_bounds = array<i64: 1, 32>}, {pipeline_mode = #tpu.pipeline_mode<synchronous>, transform_indices = @transform_3, window_bounds = array<i64: 16, 128>}, {pipeline_mode = #tpu.pipeline_mode<synchronous>, transform_indices = @transform_4, window_bounds = array<i64: 32, 128>}, {pipeline_mode = #tpu.pipeline_mode<synchronous>, transform_indices = @transform_5, window_bounds = array<i64: 1, 128>}, {pipeline_mode = #tpu.pipeline_mode<synchronous>, transform_indices = @transform_6, window_bounds = array<i64: 32, 16>}, {pipeline_mode = #tpu.pipeline_mode<synchronous>, transform_indices = @transform_7, window_bounds = array<i64: 1, 16>}, {pipeline_mode = #tpu.pipeline_mode<synchronous>, transform_indices = @transform_8, window_bounds = array<i64: 16, 4>}, {pipeline_mode = #tpu.pipeline_mode<synchronous>, transform_indices = @transform_9, window_bounds = array<i64: 1, 4>}, {pipeline_mode = #tpu.pipeline_mode<synchronous>, transform_indices = @transform_10, window_bounds = array<i64: 8, 4>}]} {
    %c0_i32 = arith.constant 0 : i32
    %0 = arith.cmpi eq, %arg0, %c0_i32 : i32
    %1 = arith.extui %0 : i1 to i32
    %c0_i32_0 = arith.constant 0 : i32
    %2 = arith.cmpi ne, %1, %c0_i32_0 : i32
    scf.if %2 {
      %c0_29 = arith.constant 0 : index
      %c0_30 = arith.constant 0 : index
      %55 = vector.load %arg1[%c0_29, %c0_30] : memref<16x80xf32, #tpu.memory_space<vmem>>, vector<16x80xf32>
      %c0_31 = arith.constant 0 : index
      %c0_32 = arith.constant 0 : index
      %56 = vector.load %arg2[%c0_31, %c0_32] : memref<80x32xf32, #tpu.memory_space<vmem>>, vector<80x32xf32>
      %cst_33 = arith.constant dense<0.000000e+00> : vector<16x32xf32>
      %57 = tpu.matmul %55, %56, %cst_33 {dimension_numbers = #tpu.dot_dimension_numbers<[1], [0], [0], [1], [0, 0, 1, 1], [], []>} : vector<16x80xf32>, vector<80x32xf32>, vector<16x32xf32> -> vector<16x32xf32>
      %c0_34 = arith.constant 0 : index
      %c0_35 = arith.constant 0 : index
      %58 = vector.load %arg3[%c0_34, %c0_35] : memref<1x32xf32, #tpu.memory_space<vmem>>, vector<1x32xf32>
      %59 = vector.broadcast %58 : vector<1x32xf32> to vector<16x32xf32>
      %60 = arith.addf %57, %59 : vector<16x32xf32>
      %cst_36 = arith.constant 0.000000e+00 : f32
      %61 = vector.broadcast %cst_36 : f32 to vector<16x32xf32>
      %62 = arith.maximumf %60, %61 : vector<16x32xf32>
      %63 = vector.extract_strided_slice %62 {offsets = [0, 0], sizes = [8, 16], strides = [1, 1]} : vector<16x32xf32> to vector<8x16xf32>
      %c0_37 = arith.constant 0 : index
      %c0_38 = arith.constant 0 : index
      %c0_39 = arith.constant 0 : index
      %64 = vector.load %arg12[%c0_37, %c0_38, %c0_39] : memref<4x8x16xf32, #tpu.memory_space<vmem>>, vector<1x8x16xf32>
      %65 = vector.shape_cast %64 : vector<1x8x16xf32> to vector<8x16xf32>
      %66 = vector.shape_cast %63 : vector<8x16xf32> to vector<1x8x16xf32>
      tpu.vector_store %arg12[%c0_37, %c0_38, %c0_39], %66 {strides = array<i32>} : memref<4x8x16xf32, #tpu.memory_space<vmem>>, vector<1x8x16xf32>,
      %67 = vector.extract_strided_slice %62 {offsets = [8, 0], sizes = [8, 16], strides = [1, 1]} : vector<16x32xf32> to vector<8x16xf32>
      %c1 = arith.constant 1 : index
      %c0_40 = arith.constant 0 : index
      %c0_41 = arith.constant 0 : index
      %68 = vector.load %arg12[%c1, %c0_40, %c0_41] : memref<4x8x16xf32, #tpu.memory_space<vmem>>, vector<1x8x16xf32>
      %69 = vector.shape_cast %68 : vector<1x8x16xf32> to vector<8x16xf32>
      %70 = vector.shape_cast %67 : vector<8x16xf32> to vector<1x8x16xf32>
      tpu.vector_store %arg12[%c1, %c0_40, %c0_41], %70 {strides = array<i32>} : memref<4x8x16xf32, #tpu.memory_space<vmem>>, vector<1x8x16xf32>,
      %71 = vector.extract_strided_slice %62 {offsets = [0, 16], sizes = [8, 16], strides = [1, 1]} : vector<16x32xf32> to vector<8x16xf32>
      %c2 = arith.constant 2 : index
      %c0_42 = arith.constant 0 : index
      %c0_43 = arith.constant 0 : index
      %72 = vector.load %arg12[%c2, %c0_42, %c0_43] : memref<4x8x16xf32, #tpu.memory_space<vmem>>, vector<1x8x16xf32>
      %73 = vector.shape_cast %72 : vector<1x8x16xf32> to vector<8x16xf32>
      %74 = vector.shape_cast %71 : vector<8x16xf32> to vector<1x8x16xf32>
      tpu.vector_store %arg12[%c2, %c0_42, %c0_43], %74 {strides = array<i32>} : memref<4x8x16xf32, #tpu.memory_space<vmem>>, vector<1x8x16xf32>,
      %75 = vector.extract_strided_slice %62 {offsets = [8, 16], sizes = [8, 16], strides = [1, 1]} : vector<16x32xf32> to vector<8x16xf32>
      %c3 = arith.constant 3 : index
      %c0_44 = arith.constant 0 : index
      %c0_45 = arith.constant 0 : index
      %76 = vector.load %arg12[%c3, %c0_44, %c0_45] : memref<4x8x16xf32, #tpu.memory_space<vmem>>, vector<1x8x16xf32>
      %77 = vector.shape_cast %76 : vector<1x8x16xf32> to vector<8x16xf32>
      %78 = vector.shape_cast %75 : vector<8x16xf32> to vector<1x8x16xf32>
      tpu.vector_store %arg12[%c3, %c0_44, %c0_45], %78 {strides = array<i32>} : memref<4x8x16xf32, #tpu.memory_space<vmem>>, vector<1x8x16xf32>,
      %cst_46 = arith.constant 0.000000e+00 : f32
      %79 = vector.broadcast %cst_46 : f32 to vector<1x8x32xf32>
      %c0_47 = arith.constant 0 : index
      %c0_48 = arith.constant 0 : index
      %c0_49 = arith.constant 0 : index
      %80 = vector.load %arg13[%c0_47, %c0_48, %c0_49] : memref<1x8x32xf32, #tpu.memory_space<vmem>>, vector<1x8x32xf32>
      tpu.vector_store %arg13[%c0_47, %c0_48, %c0_49], %79 {strides = array<i32>} : memref<1x8x32xf32, #tpu.memory_space<vmem>>, vector<1x8x32xf32>,
      %cst_50 = arith.constant 0.000000e+00 : f32
      %81 = vector.broadcast %cst_50 : f32 to vector<1x8x32xf32>
      %c0_51 = arith.constant 0 : index
      %c0_52 = arith.constant 0 : index
      %c0_53 = arith.constant 0 : index
      %82 = vector.load %arg14[%c0_51, %c0_52, %c0_53] : memref<1x8x32xf32, #tpu.memory_space<vmem>>, vector<1x8x32xf32>
      tpu.vector_store %arg14[%c0_51, %c0_52, %c0_53], %81 {strides = array<i32>} : memref<1x8x32xf32, #tpu.memory_space<vmem>>, vector<1x8x32xf32>,
      %cst_54 = arith.constant 0xFF800000 : f32
      %83 = vector.broadcast %cst_54 : f32 to vector<8x32xf32>
      %c0_55 = arith.constant 0 : index
      %c0_56 = arith.constant 0 : index
      %84 = vector.load %arg15[%c0_55, %c0_56] : memref<8x32xf32, #tpu.memory_space<vmem>>, vector<8x32xf32>
      tpu.vector_store %arg15[%c0_55, %c0_56], %83 {strides = array<i32>} : memref<8x32xf32, #tpu.memory_space<vmem>>, vector<8x32xf32>,
    } else {
    }
    %3 = arith.index_cast %arg0 : i32 to index
    %c0 = arith.constant 0 : index
    %c0_1 = arith.constant 0 : index
    %4 = vector.load %arg12[%3, %c0, %c0_1] : memref<4x8x16xf32, #tpu.memory_space<vmem>>, vector<1x8x16xf32>
    %5 = vector.shape_cast %4 : vector<1x8x16xf32> to vector<8x16xf32>
    %c0_2 = arith.constant 0 : index
    %c0_3 = arith.constant 0 : index
    %6 = vector.load %arg4[%c0_2, %c0_3] : memref<16x128xf32, #tpu.memory_space<vmem>>, vector<16x128xf32>
    %cst = arith.constant dense<0.000000e+00> : vector<8x128xf32>
    %7 = tpu.matmul %5, %6, %cst {dimension_numbers = #tpu.dot_dimension_numbers<[1], [0], [0], [1], [0, 0, 1, 1], [], []>} : vector<8x16xf32>, vector<16x128xf32>, vector<8x128xf32> -> vector<8x128xf32>
    %c0_4 = arith.constant 0 : index
    %c0_5 = arith.constant 0 : index
    %c0_6 = arith.constant 0 : index
    %8 = vector.load %arg13[%c0_4, %c0_5, %c0_6] : memref<1x8x32xf32, #tpu.memory_space<vmem>>, vector<1x8x32xf32>
    %9 = vector.shape_cast %8 : vector<1x8x32xf32> to vector<8x32xf32>
    %c0_7 = arith.constant 0 : index
    %c0_8 = arith.constant 0 : index
    %10 = vector.load %arg5[%c0_7, %c0_8] : memref<32x128xf32, #tpu.memory_space<vmem>>, vector<32x128xf32>
    %cst_9 = arith.constant dense<0.000000e+00> : vector<8x128xf32>
    %11 = tpu.matmul %9, %10, %cst_9 {dimension_numbers = #tpu.dot_dimension_numbers<[1], [0], [0], [1], [0, 0, 1, 1], [], []>} : vector<8x32xf32>, vector<32x128xf32>, vector<8x128xf32> -> vector<8x128xf32>
    %12 = arith.addf %7, %11 : vector<8x128xf32>
    %c0_10 = arith.constant 0 : index
    %c0_11 = arith.constant 0 : index
    %13 = vector.load %arg6[%c0_10, %c0_11] : memref<1x128xf32, #tpu.memory_space<vmem>>, vector<1x128xf32>
    %14 = vector.broadcast %13 : vector<1x128xf32> to vector<8x128xf32>
    %15 = arith.addf %12, %14 : vector<8x128xf32>
    %16 = vector.extract_strided_slice %15 {offsets = [0, 0], sizes = [8, 32], strides = [1, 1]} : vector<8x128xf32> to vector<8x32xf32>
    %17 = arith.negf %16 : vector<8x32xf32>
    %18 = math.exp %17 : vector<8x32xf32>
    %cst_12 = arith.constant 1.000000e+00 : f32
    %19 = vector.broadcast %cst_12 : f32 to vector<8x32xf32>
    %20 = arith.addf %19, %18 : vector<8x32xf32>
    %21 = arith.divf %19, %20 : vector<8x32xf32>
    %22 = vector.extract_strided_slice %15 {offsets = [0, 32], sizes = [8, 32], strides = [1, 1]} : vector<8x128xf32> to vector<8x32xf32>
    %23 = arith.negf %22 : vector<8x32xf32>
    %24 = math.exp %23 : vector<8x32xf32>
    %cst_13 = arith.constant 1.000000e+00 : f32
    %25 = vector.broadcast %cst_13 : f32 to vector<8x32xf32>
    %26 = arith.addf %25, %24 : vector<8x32xf32>
    %27 = arith.divf %25, %26 : vector<8x32xf32>
    %28 = vector.extract_strided_slice %15 {offsets = [0, 64], sizes = [8, 32], strides = [1, 1]} : vector<8x128xf32> to vector<8x32xf32>
    %29 = math.tanh %28 : vector<8x32xf32>
    %30 = vector.extract_strided_slice %15 {offsets = [0, 96], sizes = [8, 32], strides = [1, 1]} : vector<8x128xf32> to vector<8x32xf32>
    %31 = arith.negf %30 : vector<8x32xf32>
    %32 = math.exp %31 : vector<8x32xf32>
    %cst_14 = arith.constant 1.000000e+00 : f32
    %33 = vector.broadcast %cst_14 : f32 to vector<8x32xf32>
    %34 = arith.addf %33, %32 : vector<8x32xf32>
    %35 = arith.divf %33, %34 : vector<8x32xf32>
    %c0_15 = arith.constant 0 : index
    %c0_16 = arith.constant 0 : index
    %c0_17 = arith.constant 0 : index
    %36 = vector.load %arg14[%c0_15, %c0_16, %c0_17] : memref<1x8x32xf32, #tpu.memory_space<vmem>>, vector<1x8x32xf32>
    %37 = vector.shape_cast %36 : vector<1x8x32xf32> to vector<8x32xf32>
    %38 = arith.mulf %27, %37 : vector<8x32xf32>
    %39 = arith.mulf %21, %29 : vector<8x32xf32>
    %40 = arith.addf %38, %39 : vector<8x32xf32>
    %41 = math.tanh %40 : vector<8x32xf32>
    %42 = arith.mulf %35, %41 : vector<8x32xf32>
    %c0_18 = arith.constant 0 : index
    %c0_19 = arith.constant 0 : index
    %c0_20 = arith.constant 0 : index
    %43 = vector.load %arg14[%c0_18, %c0_19, %c0_20] : memref<1x8x32xf32, #tpu.memory_space<vmem>>, vector<1x8x32xf32>
    %44 = vector.shape_cast %43 : vector<1x8x32xf32> to vector<8x32xf32>
    %45 = vector.shape_cast %40 : vector<8x32xf32> to vector<1x8x32xf32>
    tpu.vector_store %arg14[%c0_18, %c0_19, %c0_20], %45 {strides = array<i32>} : memref<1x8x32xf32, #tpu.memory_space<vmem>>, vector<1x8x32xf32>,
    %c0_21 = arith.constant 0 : index
    %c0_22 = arith.constant 0 : index
    %c0_23 = arith.constant 0 : index
    %46 = vector.load %arg13[%c0_21, %c0_22, %c0_23] : memref<1x8x32xf32, #tpu.memory_space<vmem>>, vector<1x8x32xf32>
    %47 = vector.shape_cast %46 : vector<1x8x32xf32> to vector<8x32xf32>
    %48 = vector.shape_cast %42 : vector<8x32xf32> to vector<1x8x32xf32>
    tpu.vector_store %arg13[%c0_21, %c0_22, %c0_23], %48 {strides = array<i32>} : memref<1x8x32xf32, #tpu.memory_space<vmem>>, vector<1x8x32xf32>,
    %c0_24 = arith.constant 0 : index
    %c0_25 = arith.constant 0 : index
    %49 = vector.load %arg15[%c0_24, %c0_25] : memref<8x32xf32, #tpu.memory_space<vmem>>, vector<8x32xf32>
    %50 = arith.maximumf %49, %42 : vector<8x32xf32>
    %c0_26 = arith.constant 0 : index
    %c0_27 = arith.constant 0 : index
    %51 = vector.load %arg15[%c0_26, %c0_27] : memref<8x32xf32, #tpu.memory_space<vmem>>, vector<8x32xf32>
    tpu.vector_store %arg15[%c0_26, %c0_27], %50 {strides = array<i32>} : memref<8x32xf32, #tpu.memory_space<vmem>>, vector<8x32xf32>,
    %c3_i32 = arith.constant 3 : i32
    %52 = arith.cmpi eq, %arg0, %c3_i32 : i32
    %53 = arith.extui %52 : i1 to i32
    %c0_i32_28 = arith.constant 0 : i32
    %54 = arith.cmpi ne, %53, %c0_i32_28 : i32
    scf.if %54 {
      %c0_29 = arith.constant 0 : index
      %c0_30 = arith.constant 0 : index
      %55 = vector.load %arg15[%c0_29, %c0_30] : memref<8x32xf32, #tpu.memory_space<vmem>>, vector<8x32xf32>
      %56 = math.tanh %55 : vector<8x32xf32>
      %c0_31 = arith.constant 0 : index
      %c0_32 = arith.constant 0 : index
      %57 = vector.load %arg7[%c0_31, %c0_32] : memref<32x16xf32, #tpu.memory_space<vmem>>, vector<32x16xf32>
      %cst_33 = arith.constant dense<0.000000e+00> : vector<8x16xf32>
      %58 = tpu.matmul %56, %57, %cst_33 {dimension_numbers = #tpu.dot_dimension_numbers<[1], [0], [0], [1], [0, 0, 1, 1], [], []>} : vector<8x32xf32>, vector<32x16xf32>, vector<8x16xf32> -> vector<8x16xf32>
      %c0_34 = arith.constant 0 : index
      %c0_35 = arith.constant 0 : index
      %59 = vector.load %arg8[%c0_34, %c0_35] : memref<1x16xf32, #tpu.memory_space<vmem>>, vector<1x16xf32>
      %60 = vector.broadcast %59 : vector<1x16xf32> to vector<8x16xf32>
      %61 = arith.addf %58, %60 : vector<8x16xf32>
      %62 = math.tanh %61 : vector<8x16xf32>
      %c0_36 = arith.constant 0 : index
      %c0_37 = arith.constant 0 : index
      %63 = vector.load %arg9[%c0_36, %c0_37] : memref<16x4xf32, #tpu.memory_space<vmem>>, vector<16x4xf32>
      %cst_38 = arith.constant dense<0.000000e+00> : vector<8x4xf32>
      %64 = tpu.matmul %62, %63, %cst_38 {dimension_numbers = #tpu.dot_dimension_numbers<[1], [0], [0], [1], [0, 0, 1, 1], [], []>} : vector<8x16xf32>, vector<16x4xf32>, vector<8x4xf32> -> vector<8x4xf32>
      %c0_39 = arith.constant 0 : index
      %c0_40 = arith.constant 0 : index
      %65 = vector.load %arg10[%c0_39, %c0_40] : memref<1x4xf32, #tpu.memory_space<vmem>>, vector<1x4xf32>
      %66 = vector.broadcast %65 : vector<1x4xf32> to vector<8x4xf32>
      %67 = arith.addf %64, %66 : vector<8x4xf32>
      %c0_41 = arith.constant 0 : index
      %c0_42 = arith.constant 0 : index
      %68 = vector.load %arg11[%c0_41, %c0_42] : memref<8x4xf32, #tpu.memory_space<vmem>>, vector<8x4xf32>
      tpu.vector_store %arg11[%c0_41, %c0_42], %67 {strides = array<i32>} : memref<8x4xf32, #tpu.memory_space<vmem>>, vector<8x4xf32>,
    } else {
    }
    return
  }
  func.func @transform_0(%arg0: i32) -> (i32, i32) {
    %c0_i32 = arith.constant 0 : i32
    %c0_i32_0 = arith.constant 0 : i32
    %c0_i32_1 = arith.constant 0 : i32
    return %c0_i32, %c0_i32_0 : i32, i32
  }
  func.func @transform_1(%arg0: i32) -> (i32, i32) {
    %c0_i32 = arith.constant 0 : i32
    %c0_i32_0 = arith.constant 0 : i32
    %c0_i32_1 = arith.constant 0 : i32
    return %c0_i32, %c0_i32_0 : i32, i32
  }
  func.func @transform_2(%arg0: i32) -> (i32, i32) {
    %c0_i32 = arith.constant 0 : i32
    %c0_i32_0 = arith.constant 0 : i32
    %c0_i32_1 = arith.constant 0 : i32
    return %c0_i32, %c0_i32_0 : i32, i32
  }
  func.func @transform_3(%arg0: i32) -> (i32, i32) {
    %c0_i32 = arith.constant 0 : i32
    %c0_i32_0 = arith.constant 0 : i32
    %c0_i32_1 = arith.constant 0 : i32
    return %c0_i32, %c0_i32_0 : i32, i32
  }
  func.func @transform_4(%arg0: i32) -> (i32, i32) {
    %c0_i32 = arith.constant 0 : i32
    %c0_i32_0 = arith.constant 0 : i32
    %c0_i32_1 = arith.constant 0 : i32
    return %c0_i32, %c0_i32_0 : i32, i32
  }
  func.func @transform_5(%arg0: i32) -> (i32, i32) {
    %c0_i32 = arith.constant 0 : i32
    %c0_i32_0 = arith.constant 0 : i32
    %c0_i32_1 = arith.constant 0 : i32
    return %c0_i32, %c0_i32_0 : i32, i32
  }
  func.func @transform_6(%arg0: i32) -> (i32, i32) {
    %c0_i32 = arith.constant 0 : i32
    %c0_i32_0 = arith.constant 0 : i32
    %c0_i32_1 = arith.constant 0 : i32
    return %c0_i32, %c0_i32_0 : i32, i32
  }
  func.func @transform_7(%arg0: i32) -> (i32, i32) {
    %c0_i32 = arith.constant 0 : i32
    %c0_i32_0 = arith.constant 0 : i32
    %c0_i32_1 = arith.constant 0 : i32
    return %c0_i32, %c0_i32_0 : i32, i32
  }
  func.func @transform_8(%arg0: i32) -> (i32, i32) {
    %c0_i32 = arith.constant 0 : i32
    %c0_i32_0 = arith.constant 0 : i32
    %c0_i32_1 = arith.constant 0 : i32
    return %c0_i32, %c0_i32_0 : i32, i32
  }
  func.func @transform_9(%arg0: i32) -> (i32, i32) {
    %c0_i32 = arith.constant 0 : i32
    %c0_i32_0 = arith.constant 0 : i32
    %c0_i32_1 = arith.constant 0 : i32
    return %c0_i32, %c0_i32_0 : i32, i32
  }
  func.func @transform_10(%arg0: i32) -> (i32, i32) {
    %c0_i32 = arith.constant 0 : i32
    %c0_i32_0 = arith.constant 0 : i32
    %c0_i32_1 = arith.constant 0 : i32
    return %c0_i32, %c0_i32_0 : i32, i32
  }
}

</mosaic_0001>

<bundles_post_ra>
// kernel: clstm_forward.1
= control target key start
LH: loop header
LB: loop body
LE: loop exit
PB: predicated region body
PF: predicated region fallthrough
CT: control target
= control target key end

     0   :  { %s1062_s13 = smov 0   ;;  %s1174_s0 = inlined_call_operand.vmem [shape: f32[16,80], index: 0, kind: input, shape index: {}]   ;;  %s1175_s1 = inlined_call_operand.vmem [shape: f32[80,32], index: 1, kind: input, shape index: {}]   ;;  %s1176_s2 = inlined_call_operand.vmem [shape: f32[1,32], index: 2, kind: input, shape index: {}]   ;;  %s1177_s3 = inlined_call_operand.vmem [shape: f32[16,128], index: 3, kind: input, shape index: {}]   ;;  %s1178_s4 = inlined_call_operand.vmem [shape: f32[32,128], index: 4, kind: input, shape index: {}]   ;;  %s1179_s5 = inlined_call_operand.vmem [shape: f32[1,128], index: 5, kind: input, shape index: {}]   ;;  %s1180_s6 = inlined_call_operand.vmem [shape: f32[32,16], index: 6, kind: input, shape index: {}]   ;;  %s1181_s7 = inlined_call_operand.vmem [shape: f32[1,16], index: 7, kind: input, shape index: {}]   ;;  %s1182_s8 = inlined_call_operand.vmem [shape: f32[16,4], index: 8, kind: input, shape index: {}]   ;;  %s1183_s9 = inlined_call_operand.vmem [shape: f32[1,4], index: 9, kind: input, shape index: {}]   ;;  %s1184_s10 = inlined_call_operand.vmem [shape: f32[8,4], index: 10, kind: output, shape index: {}]  }
   0x1 LB: > { %s1068_s14 = sadd.s32 4294967295, %s995_s13   ;;  %p855_p0 = scmp.ge.s32.totalorder %s995_s13, 1  ;;  %s995_s13 = sphi %s1062_s13, %s20_s13  }
   0x2   : > { %p297_p1 = scmp.lt.s32.totalorder %s995_s13, 5 }
   0x4   : > { %p298_p2 = pnand %p855_p0, %p297_p1 }
   0x5   : > { %p856_p3 = scmp.ne.s32.totalorder (!%p298_p2), %s1068_s14, 0 }
   0x6   : > { %301 = sbr.rel (%p298_p2) target bundleno = 1485 (0x5cd), region = 60 }
   0xb   : > { %328 = sbr.rel (%p856_p3) target bundleno = 356 (0x164), region = 64  ;;  %s999_s23 = smov (!%p856_p3), 112  }
  0x10   : > { %v340_v0 = vld [vmem:[%s1175_s1 + $0x48] sm:$0xff]  ;;  %v339_v1 = vld [vmem:[%s1175_s1 + $0x40] sm:$0xff]  ;;  %vm348_vm0 = vcmask 654336   ;;  %v338_v2 = vld [vmem:[%s1175_s1 + $0x38] sm:$0xff]  ;;  %vm448_vm1 = vcmask 261120   ;;  %v997_v13 = vmov 0.0  }
  0x11   : > { %900 = vmatprep.subr.mxu0 %v340_v0  ;;  %v329_v3 = vld [vmem:[%s1174_s0] sm:$0xff]  ;;  %v337_v4 = vld [vmem:[%s1175_s1 + $0x30] sm:$0xff]  ;;  %v336_v5 = vld [vmem:[%s1175_s1 + $0x28] sm:$0xff]  ;;  %449 = vst.msk [vmem:[#allocation3] sm:$0xff] %vm448_vm1, %v997_v13  ;;  %v998_v14 = vmov -inf   ;;  %vm432_vm2 = vcmask 130048  }
  0x12   : > { %901 = vmatpush3.msra.mxu0 %v340_v0  ;;  %920 = vmatprep.mubr.msk.f32.mxu0 %vm348_vm0, %v329_v3  ;;  %v335_v6 = vld [vmem:[%s1175_s1 + $0x20] sm:$0xff]  ;;  %v334_v7 = vld [vmem:[%s1175_s1 + $0x18] sm:$0xff]  ;;  %v333_v8 = vld [vmem:[%s1175_s1 + $0x10] sm:$0xff]  ;;  %450 = vst.msk [vmem:[#allocation4] sm:$0xff] %vm448_vm1, %v997_v13 }
  0x13   : > { %902 = vmatprep.subr.mxu0 %v339_v1  ;;  %v332_v9 = vld [vmem:[%s1175_s1 + $0x8] sm:$0xff]  ;;  %v331_v10 = vld [vmem:[%s1175_s1] sm:$0xff]  ;;  %451 = vst.msk [vmem:[#allocation5] sm:$0xff] %vm448_vm1, %v998_v14 }
  0x14   : > { %903 = vmatpush3.msra.mxu0 %v339_v1  ;;  %v330_v11 = vld [vmem:[%s1174_s0 + $0x8] sm:$0xff]  ;;  %v857_v12 = vld [vmem:[%s1176_s2] ss:$0 sm:$0xff] }
  0x15   : > { %904 = vmatprep.subr.mxu0 %v338_v2 }
  0x16   : > { %905 = vmatpush3.msra.mxu0 %v338_v2 }
  0x17   : > { %906 = vmatprep.subr.mxu0 %v337_v4 }
  0x18   : > { %907 = vmatpush3.msra.mxu0 %v337_v4 }
  0x19   : > { %908 = vmatprep.subr.mxu0 %v336_v5 }
  0x1a   : > { %909 = vmatpush3.msra.mxu0 %v336_v5 }
  0x1b   : > { %910 = vmatprep.subr.mxu0 %v335_v6 }
  0x1c   : > { %911 = vmatpush3.msra.mxu0 %v335_v6 }
  0x1d   : > { %912 = vmatprep.subr.mxu0 %v334_v7 }
  0x1e   : > { %913 = vmatpush3.msra.mxu0 %v334_v7 }
  0x1f   : > { %914 = vmatprep.subr.mxu0 %v333_v8 }
  0x20   : > { %915 = vmatpush3.msra.mxu0 %v333_v8 }
  0x21   : > { %916 = vmatprep.subr.mxu0 %v332_v9 }
  0x22   : > { %917 = vmatpush3.msra.mxu0 %v332_v9 }
  0x23   : > { %918 = vmatprep.subr.mxu0 %v331_v10 }
  0x24   : > { %919 = vmatpush3.msra.mxu0 %v331_v10 }
  0x25   : > { %921 = vmatmul.mubr.msk.f32.vlgmr.msra.gmra.mxu0 %vm348_vm0, %v330_v11 }
  0xe5   : > { %v922_v15 = vpop.f32.mrf.mxu0 }
  0xe6   : > { %v427_v16 = vadd.f32 %v922_v15, %v857_v12 }
  0xe7   : > { %v421_v17 = vpop.f32.mrf.mxu0 }
  0xe8   : > { %v431_v18 = vmax.f32 %v427_v16, 0.0  ;;  %v422_v19 = vadd.f32 %v857_v12, %v421_v17 }
  0xea   : > { %435 = vst.msk [vmem:[#allocation2 + $0x8] sm:$0xff] %vm432_vm2, %v431_v18  ;;  %v430_v20 = vmax.f32 %v422_v19, 0.0 }
  0xec   : > { %433 = vst.msk [vmem:[#allocation2] sm:$0xff] %vm432_vm2, %v430_v20  ;;  %437 = vrot.lane.b32.xlu0 %v430_v20, %s999_s23 }
  0xf0   : > { %443 = vrot.lane.b32.xlu0 %v431_v18, %s999_s23 }
 0x15e   : > { %v438_v21 = vpop.permute.xlu0 %437 }
 0x15f   : > { %441 = vst.msk [vmem:[#allocation2 + $0x10] sm:$0xff] %vm432_vm2, %v438_v21 }
 0x162   : > { %v444_v22 = vpop.permute.xlu0 %443 }
 0x163   : > { %447 = vst.msk [vmem:[#allocation2 + $0x18] sm:$0xff] %vm432_vm2, %v444_v22 }
 0x164 PF: > { %v461_v23 = vld [vmem:[%s1178_s4 + $0x18] sm:$0xff]  ;;  %v456_v24 = vld [vmem:[%s1177_s3 + $0x8] sm:$0xff]  ;;  %s860_s28 = sshll.u32 %s1068_s14, 3  ;;  %v1000_v25 = vmov 0.0   ;;  %v460_v26 = vld [vmem:[%s1178_s4 + $0x10] sm:$0xff]  ;;  %vm536_vm3 = vcmask 130048  }
 0x165   : > { %923 = vmatprep.subr.mxu0 %v1000_v25  ;;  %934 = vmatprep.subr.mxu1 %v1000_v25  ;;  %v455_v27 = vld [vmem:[%s1177_s3] sm:$0xff]  ;;  %v459_v28 = vld [vmem:[%s1178_s4 + $0x8] sm:$0xff]  ;;  %s453_s17 = scalar_lea.vmem [#allocation2], %s860_s28  ;;  %vm1001_vm4 = vmmov 0   ;;  %vm462_vm5 = vcmask 261120   ;;  %s1002_s22 = smov 64  }
 0x166   : > { %924 = vmatpush3.msra.mxu0 %v461_v23  ;;  %935 = vmatpush3.msra.mxu1 %v456_v24  ;;  %v458_v30 = vld [vmem:[%s1178_s4] sm:$0xff]  ;;  %v625_v40 = vld [vmem:[#allocation4] sm:$0xff]  ;;  %s1003_s23 = smov 32   ;;  %s1004_s24 = smov 96   ;;  %v657_v55 = vld [vmem:[#allocation5] sm:$0xff] }
 0x167   : > { %925 = vmatprep.subr.mxu0 %v1000_v25  ;;  %936 = vmatprep.subr.mxu1 %v1000_v25  ;;  %v457_v31 = vld [vmem:[#allocation3] sm:$0xff]  ;;  %p865_p4 = scmp.ne.s32.totalorder %s1068_s14, 3 }
 0x168   : > { %926 = vmatpush3.msra.mxu0 %v460_v26  ;;  %937 = vmatpush3.msra.mxu1 %v455_v27  ;;  %v863_v35 = vld [vmem:[%s1179_s5] ss:$0 sm:$0xff] }
 0x169   : > { %927 = vmatprep.subr.mxu0 %v1000_v25  ;;  %938 = vmatprep.mubr.msk.f32.mxu1 %vm1001_vm4, %v1000_v25 }
 0x16a   : > { %v454_v29 = vld [vmem:[%s453_s17] sm:$0xff]  ;;  %928 = vmatpush3.msra.mxu0 %v459_v28  ;;  %931 = vmatprep.mubr.msk.f32.mxu0 %vm1001_vm4, %v1000_v25 }
 0x16b   : > { %939 = vmatmul.mubr.msk.f32.vlgmr.msra.gmra.mxu1 %vm536_vm3, %v454_v29  ;;  %929 = vmatprep.subr.mxu0 %v1000_v25 }
 0x16c   : > { %930 = vmatpush3.msra.mxu0 %v458_v30 }
 0x16d   : > { %932 = vmatmul.mubr.msk.f32.vlgmr.msra.gmra.mxu0 %vm462_vm5, %v457_v31 }
 0x22b   : > { %v606_v32 = vpop.f32.mrf.mxu1 }
 0x22d   : > { %v940_v33 = vpop.f32.mrf.mxu1  ;;  %v532_v34 = vpop.f32.mrf.mxu0 }
 0x22e   : > { %v607_v36 = vadd.f32 %v606_v32, %v532_v34 }
 0x22f   : > { %v933_v37 = vpop.f32.mrf.mxu0 }
 0x230   : > { %v617_v38 = vadd.f32 %v863_v35, %v607_v36 }
 0x232   : > { %977 = vtanh.f32 %v617_v38  ;;  %v864_v41 = vmul.f32 -1.442695, %v617_v38 }
 0x234   : > { %979 = vpow2.f32 %v864_v41 }
 0x23f   : > { %v978_v39 = vpop.eup %977 }
 0x240   : > { %632 = vrot.lane.b32.xlu0 %v978_v39, %s1002_s22 }
 0x241   : > { %v980_v42 = vpop.eup %979 }
 0x242   : > { %v621_v43 = vadd.f32 1.0, %v980_v42 }
 0x244   : > { %627 = vrot.lane.b32.xlu0 %v625_v40, %s1003_s23  ;;  %981 = vrcp.f32 %v621_v43 }
 0x251   : > { %v982_v44 = vpop.eup %981 }
 0x2b2   : > { %v633_v45 = vpop.permute.xlu0 %632 }
 0x2b3   : > { %v635_v46 = vmul.f32 %v982_v44, %v633_v45 }
 0x2b5   : > { %637 = vrot.lane.b32.xlu1 %v635_v46, %s1003_s23 }
 0x2b6   : > { %v628_v47 = vpop.permute.xlu0 %627 }
 0x2b7   : > { %v630_v48 = vmul.f32 %v982_v44, %v628_v47 }
 0x327   : > { %v638_v49 = vpop.permute.xlu1 %637 }
 0x328   : > { %v640_v50 = vadd.f32 %v638_v49, %v630_v48 }
 0x32a   : > { %983 = vtanh.f32 %v640_v50 }
 0x337   : > { %v984_v51 = vpop.eup %983 }
 0x338   : > { %643 = vrot.lane.b32.xlu1 %v984_v51, %s1002_s22 }
 0x33c   : > { %648 = vrot.lane.b32.xlu1 %v640_v50, %s1004_s24 }
 0x3aa   : > { %v644_v52 = vpop.permute.xlu1 %643 }
 0x3ab   : > { %v646_v53 = vmul.f32 %v982_v44, %v644_v52 }
 0x3ad   : > { %653 = vrot.lane.b32.xlu0 %v646_v53, %s1003_s23 }
 0x3ae   : > { %v649_v54 = vpop.permute.xlu1 %648 }
 0x3af   : > { %651 = vst.msk [vmem:[#allocation4] sm:$0xff] %vm462_vm5, %v649_v54 }
 0x41e   : > { %663 = sbr.rel (%p865_p4) target bundleno = 1485 (0x5cd), region = 68 }
 0x41f   : > { %v654_v56 = vpop.permute.xlu0 %653 }
 0x420   : > { %656 = vst.msk [vmem:[#allocation3] sm:$0xff] %vm462_vm5, %v654_v56  ;;  %v658_v57 = vmax.f32 %v657_v55, %v654_v56 }
 0x422   : > { %659 = vst.msk [vmem:[#allocation5] sm:$0xff] %vm462_vm5, %v658_v57 }
 0x423   : > { %v669_v58 = vld [vmem:[%s1180_s6 + $0x18] sm:$0xff]  ;;  %v1005_v59 = vmov 0.0   ;;  %v668_v60 = vld [vmem:[%s1180_s6 + $0x10] sm:$0xff]  ;;  %vm1006_vm6 = vmmov 0   ;;  %v667_v62 = vld [vmem:[%s1180_s6 + $0x8] sm:$0xff]  ;;  %vm833_vm7 = vcmask 31744  }
 0x424   : > { %941 = vmatprep.subr.mxu0 %v1005_v59  ;;  %949 = vmatprep.mubr.msk.f32.mxu0 %vm1006_vm6, %v1005_v59  ;;  %v666_v63 = vld [vmem:[%s1180_s6] sm:$0xff]  ;;  %v752_v1 = vld [vmem:[%s1182_s8 + $0x8] sm:$0xff] }
 0x425   : > { %942 = vmatpush3.msra.mxu0 %v669_v58  ;;  %952 = vmatprep.subr.mxu1 %v1005_v59  ;;  %v751_v2 = vld [vmem:[%s1182_s8] sm:$0xff] }
 0x426   : > { %943 = vmatprep.subr.mxu0 %v1005_v59  ;;  %956 = vmatprep.mubr.msk.f32.mxu1 %vm1006_vm6, %v1005_v59  ;;  %v866_v3 = vld [vmem:[%s1181_s7] ss:$0 sm:$0xff] }
 0x427   : > { %944 = vmatpush3.msra.mxu0 %v668_v60  ;;  %953 = vmatpush3.msra.mxu1 %v752_v1  ;;  %v868_v8 = vld [vmem:[%s1183_s9] ss:$0 sm:$0xff] }
 0x428   : > { %945 = vmatprep.subr.mxu0 %v1005_v59  ;;  %954 = vmatprep.subr.mxu1 %v1005_v59 }
 0x429   : > { %v664_v61 = vld [vmem:[#allocation5] sm:$0xff]  ;;  %946 = vmatpush3.msra.mxu0 %v667_v62  ;;  %955 = vmatpush3.msra.mxu1 %v751_v2 }
 0x42a   : > { %985 = vtanh.f32 %v664_v61  ;;  %947 = vmatprep.subr.mxu0 %v1005_v59 }
 0x42b   : > { %948 = vmatpush3.msra.mxu0 %v666_v63 }
 0x437   : > { %v986_v0 = vpop.eup %985 }
 0x438   : > { %950 = vmatmul.mubr.msk.f32.vlgmr.msra.gmra.mxu0 %vm462_vm5, %v986_v0 }
 0x4f8   : > { %v746_v4 = vpop.f32.mrf.mxu0 }
 0x4f9   : > { %v747_v5 = vadd.f32 %v866_v3, %v746_v4 }
 0x4fa   : > { %v951_v6 = vpop.f32.mrf.mxu0 }
 0x4fb   : > { %987 = vtanh.f32 %v747_v5 }
 0x508   : > { %v988_v7 = vpop.eup %987 }
 0x509   : > { %957 = vmatmul.mubr.msk.f32.vlgmr.msra.gmra.mxu1 %vm536_vm3, %v988_v7 }
 0x5c9   : > { %v829_v9 = vpop.f32.mrf.mxu1 }
 0x5ca   : > { %v830_v10 = vadd.f32 %v868_v8, %v829_v9 }
 0x5cb   : > { %v958_v11 = vpop.f32.mrf.mxu1 }
 0x5cc   : > { %834 = vst.msk [vmem:[%s1184_s10] sm:$0xff] %vm833_vm7, %v830_v10 }
 0x5cd PF: > { %s20_s13 = sadd.s32 1, %s995_s13  }
 0x5ce   : > { %p17_p5 = scmp.ge.s32.totalorder %s20_s13, 6  }
 0x5d0   :  { %19 = sbr.rel (!%p17_p5) target bundleno = 1 (0x1), region = 95 }

</bundles_post_ra>
